<compile_context>
chip_gen: v7x
topology: tpu7x:2x2x1
jax: 0.10.0
libtpu: 0.0.40
codegen_flags: <defaults>
</compile_context>

<pallas_src>
import jax
import jax.numpy as jnp
from jax.experimental import pallas as pl
from jax.experimental.pallas import tpu as pltpu


def _round_up(x, m):
    return (x + m - 1) // m * m


def cls_head_kernel(x_ref, w_ref, bias_ref, o_ref):
    # x_ref: (tb, K_pad), w_ref: (K_pad, N_pad), bias_ref: (1, N_pad) f32.
    # Canonical (tb,K)@(K,N) MXU matmul with f32 accumulation.
    logits = jnp.dot(x_ref[...], w_ref[...], preferred_element_type=jnp.float32)
    # Padded classes carry -1e30 in the resident bias row -> ~0 after softmax.
    logits = logits + bias_ref[...]

    # Numerically-stable softmax over the class axis, all in f32 (works on
    # every generation incl. v5e which lacks bf16 VPU/EUP).
    m = jnp.max(logits, axis=-1, keepdims=True)
    e = jnp.exp(logits - m)
    denom = jnp.sum(e, axis=-1, keepdims=True)
    # NOTE: on a ragged last batch tile the out-of-range rows hold garbage;
    # harmless because their stores are masked at writeback — do not "fix".
    o_ref[...] = (e * pl.reciprocal(denom, approx=True)).astype(o_ref.dtype)


def _generation_config():
    """Per-TPU-generation (vmem_budget_bytes, vmem_limit_bytes, lane_align)."""
    kind = ""
    try:
        kind = jax.devices()[0].device_kind.lower()
    except Exception:
        pass
    if "v7" in kind or "7x" in kind:
        # v7x: 64 MiB VMEM per TensorCore -> keep footprint well under ~28 MiB.
        return 24 << 20, 28 << 20, 256
    if "v6" in kind:
        # v6e: 128 MiB physical VMEM; bigger tiles -> fewer grid-step overheads.
        return 64 << 20, 72 << 20, 256
    if "v5" in kind or "v4" in kind:
        # v5e/v5p/v4: 128 MiB physical but 16 MiB scoped default -> raise it.
        return 48 << 20, 56 << 20, 128
    # Unknown chip: stay inside the conservative 16 MiB scoped default.
    return 14 << 20, None, 128


def cls_head(x, weight, *, matmul_dtype=jnp.bfloat16, return_padded=False):
    """CLS_Head forward: softmax(x @ weight.T, axis=1).

    x:      (B, vis_dim)
    weight: (n_cls, vis_dim)  -- nn.Linear(vis_dim, n_cls, bias=False).weight
    returns (B, n_cls) probabilities (or (B, n_cls_pad) if return_padded).
    """
    B, vis_dim = x.shape
    n_cls, w_vis = weight.shape
    assert w_vis == vis_dim
    out_dtype = x.dtype

    vmem_budget, vmem_limit, lane_align = _generation_config()

    # Pad the class dim (lane / MXU-N) and the contraction dim K so every
    # load/store is lane-dense and MXU tiles are full.
    n_cls_pad = max(_round_up(n_cls, lane_align), lane_align)
    k_pad = max(_round_up(vis_dim, 128), 128)

    # Pre-transpose the weight ONCE to (K, N): the kernel then never needs a
    # transposed-RHS lowering / per-step XLU transpose of the resident weight.
    w_t = jnp.transpose(weight)                                   # (vis_dim, n_cls)
    if n_cls_pad != n_cls or k_pad != vis_dim:
        w_t = jnp.pad(w_t, ((0, k_pad - vis_dim), (0, n_cls_pad - n_cls)))
    x_p = x if k_pad == vis_dim else jnp.pad(x, ((0, 0), (0, k_pad - vis_dim)))

    # Resident additive mask row: 0 for real classes, -1e30 for padded ones.
    if n_cls_pad != n_cls:
        bias = jnp.concatenate(
            [jnp.zeros((1, n_cls), jnp.float32),
             jnp.full((1, n_cls_pad - n_cls), -1e30, jnp.float32)], axis=1)
    else:
        bias = jnp.zeros((1, n_cls_pad), jnp.float32)

    # bf16 MXU inputs (f32 accumulation inside the kernel); pass
    # matmul_dtype=None to keep full-precision inputs.
    if matmul_dtype is not None:
        x_p = x_p.astype(matmul_dtype)
        w_t = w_t.astype(matmul_dtype)

    in_bytes = jnp.dtype(x_p.dtype).itemsize
    out_bytes = jnp.dtype(out_dtype).itemsize

    # --- batch-tile sizing against the per-generation VMEM budget ---
    # Resident weight + bias: single-buffered; x / out tiles: double-buffered.
    w_bytes = k_pad * n_cls_pad * in_bytes + n_cls_pad * 4
    per_row = 2 * (k_pad * in_bytes + n_cls_pad * out_bytes)
    tb_cap = (vmem_budget - w_bytes) // per_row
    # TODO(synk): if the weight alone exceeds the budget (vocab-sized heads),
    # add a second 'arbitrary' grid axis over n_cls with an online softmax.
    tb = int(max(tb_cap // 16 * 16, 16))
    if B >= 32:
        # Guarantee >=2 grid steps so "parallel" can shard across v7x's 2 TCs.
        tb = min(tb, _round_up(-(-B // 2), 16))
    if tb >= B:
        tb = B  # full-extent block (also covers B < 16)

    grid = (pl.cdiv(B, tb),)

    def build(single_buffer_resident):
        res_kw = {"pipeline_mode": pl.Buffered(1)} if single_buffer_resident else {}
        return pl.pallas_call(
            cls_head_kernel,
            out_shape=jax.ShapeDtypeStruct((B, n_cls_pad), out_dtype),
            grid=grid,
            in_specs=[
                pl.BlockSpec((tb, k_pad), lambda i: (i, 0)),
                pl.BlockSpec((k_pad, n_cls_pad), lambda i: (0, 0), **res_kw),
                pl.BlockSpec((1, n_cls_pad), lambda i: (0, 0), **res_kw),
            ],
            out_specs=pl.BlockSpec((tb, n_cls_pad), lambda i: (i, 0)),
            compiler_params=pltpu.CompilerParams(
                dimension_semantics=("parallel",),
                vmem_limit_bytes=vmem_limit,
            ),
            cost_estimate=pl.CostEstimate(
                flops=2 * B * k_pad * n_cls_pad,
                transcendentals=B * n_cls_pad,
                bytes_accessed=(
                    B * k_pad * in_bytes
                    + k_pad * n_cls_pad * in_bytes
                    + B * n_cls_pad * out_bytes
                ),
            ),
        )(x_p, w_t, bias)

    try:
        out_padded = build(True)
    except Exception:
        # Fallback if this jax build rejects Buffered(1) for resident inputs.
        out_padded = build(False)

    if return_padded or n_cls_pad == n_cls:
        return out_padded
    # NOTE: this slice is a separate XLA op (extra output HBM traffic); pass
    # return_padded=True if the consumer tolerates a padded class dim.
    return out_padded[:, :n_cls]


def cls_head_ref(x, weight):
    logits = x.astype(jnp.float32) @ weight.astype(jnp.float32).T
    return jax.nn.softmax(logits, axis=1).astype(x.dtype)


if __name__ == "__main__":
    key = jax.random.PRNGKey(0)
    k_x, k_w = jax.random.split(key)

    B, vis_dim, n_cls = 2, 32, 8  # small shapes consistent with CLS_Head(vis_dim, n_cls)

    x = jax.random.normal(k_x, (B, vis_dim), dtype=jnp.float32)
    # Deterministic synthetic weight, same shape as nn.Linear(vis_dim, n_cls).weight
    weight = (
        jax.random.normal(k_w, (n_cls, vis_dim), dtype=jnp.float32)
        * (1.0 / jnp.sqrt(vis_dim))
    )

    out = cls_head(x, weight)
    jax.block_until_ready(out)

    ref = cls_head_ref(x, weight)
    assert out.shape == (B, n_cls)
    # Tolerance reflects bf16 matmul inputs + EUP approx reciprocal.
    assert jnp.allclose(out, ref, atol=3e-2), "mismatch vs reference"
    assert jnp.allclose(jnp.sum(out, axis=1), jnp.ones((B,)), atol=1e-2)

    print("KERNEL_OK")
</pallas_src>

<mosaic_0001>
module attributes {stable_mosaic.version = 11 : i64} {
  func.func @cls_head_kernel(%arg0: i32, %arg1: memref<2x128xbf16, #tpu.memory_space<vmem>>, %arg2: memref<128x128xbf16, #tpu.memory_space<vmem>>, %arg3: memref<1x128xf32, #tpu.memory_space<vmem>>, %arg4: memref<2x128xf32, #tpu.memory_space<vmem>>) attributes {dimension_semantics = [#tpu.dimension_semantics<parallel>], iteration_bounds = array<i64: 1>, scalar_prefetch = 0 : i64, scratch_operands = 0 : i64, tpu.core_type = #tpu.core_type<tc>, window_params = [{transform_indices = @transform_0, window_bounds = array<i64: 2, 128>}, {pipeline_mode = #tpu.pipeline_mode<synchronous>, transform_indices = @transform_1, window_bounds = array<i64: 128, 128>}, {pipeline_mode = #tpu.pipeline_mode<synchronous>, transform_indices = @transform_2, window_bounds = array<i64: 1, 128>}, {transform_indices = @transform_3, window_bounds = array<i64: 2, 128>}]} {
    %c0 = arith.constant 0 : index
    %c0_0 = arith.constant 0 : index
    %0 = vector.load %arg1[%c0, %c0_0] : memref<2x128xbf16, #tpu.memory_space<vmem>>, vector<2x128xbf16>
    %c0_1 = arith.constant 0 : index
    %c0_2 = arith.constant 0 : index
    %1 = vector.load %arg2[%c0_1, %c0_2] : memref<128x128xbf16, #tpu.memory_space<vmem>>, vector<128x128xbf16>
    %cst = arith.constant dense<0.000000e+00> : vector<2x128xf32>
    %2 = tpu.matmul %0, %1, %cst {dimension_numbers = #tpu.dot_dimension_numbers<[1], [0], [0], [1], [0, 0, 1, 1], [], []>} : vector<2x128xbf16>, vector<128x128xbf16>, vector<2x128xf32> -> vector<2x128xf32>
    %c0_3 = arith.constant 0 : index
    %c0_4 = arith.constant 0 : index
    %3 = vector.load %arg3[%c0_3, %c0_4] : memref<1x128xf32, #tpu.memory_space<vmem>>, vector<1x128xf32>
    %4 = vector.broadcast %3 : vector<1x128xf32> to vector<2x128xf32>
    %5 = arith.addf %2, %4 : vector<2x128xf32>
    %cst_5 = arith.constant dense<0xFF800000> : vector<2xf32>
    %6 = vector.multi_reduction <maximumf>, %5, %cst_5 [1] : vector<2x128xf32> to vector<2xf32>
    %7 = vector.shape_cast %6 : vector<2xf32> to vector<2x1xf32>
    %8 = vector.broadcast %7 : vector<2x1xf32> to vector<2x128xf32>
    %9 = arith.subf %5, %8 : vector<2x128xf32>
    %10 = math.exp %9 : vector<2x128xf32>
    %cst_6 = arith.constant dense<0.000000e+00> : vector<2xf32>
    %11 = vector.multi_reduction <add>, %10, %cst_6 [1] : vector<2x128xf32> to vector<2xf32>
    %12 = vector.shape_cast %11 : vector<2xf32> to vector<2x1xf32>
    %13 = tpu.reciprocal %12 {approx = true} : vector<2x1xf32> -> vector<2x1xf32>
    %14 = vector.broadcast %13 : vector<2x1xf32> to vector<2x128xf32>
    %15 = arith.mulf %10, %14 : vector<2x128xf32>
    %c0_7 = arith.constant 0 : index
    %c0_8 = arith.constant 0 : index
    %16 = vector.load %arg4[%c0_7, %c0_8] : memref<2x128xf32, #tpu.memory_space<vmem>>, vector<2x128xf32>
    tpu.vector_store %arg4[%c0_7, %c0_8], %15 {strides = array<i32>} : memref<2x128xf32, #tpu.memory_space<vmem>>, vector<2x128xf32>,
    return
  }
  func.func @transform_0(%arg0: i32) -> (i32, i32) {
    %c0_i32 = arith.constant 0 : i32
    %c0_i32_0 = arith.constant 0 : i32
    return %arg0, %c0_i32 : i32, i32
  }
  func.func @transform_1(%arg0: i32) -> (i32, i32) {
    %c0_i32 = arith.constant 0 : i32
    %c0_i32_0 = arith.constant 0 : i32
    %c0_i32_1 = arith.constant 0 : i32
    return %c0_i32, %c0_i32_0 : i32, i32
  }
  func.func @transform_2(%arg0: i32) -> (i32, i32) {
    %c0_i32 = arith.constant 0 : i32
    %c0_i32_0 = arith.constant 0 : i32
    %c0_i32_1 = arith.constant 0 : i32
    return %c0_i32, %c0_i32_0 : i32, i32
  }
  func.func @transform_3(%arg0: i32) -> (i32, i32) {
    %c0_i32 = arith.constant 0 : i32
    %c0_i32_0 = arith.constant 0 : i32
    return %arg0, %c0_i32 : i32, i32
  }
}

module attributes {stable_mosaic.version = 11 : i64} {
  func.func @cls_head_kernel(%arg0: i32, %arg1: memref<2x128xbf16, #tpu.memory_space<vmem>>, %arg2: memref<128x128xbf16, #tpu.memory_space<vmem>>, %arg3: memref<1x128xf32, #tpu.memory_space<vmem>>, %arg4: memref<2x128xf32, #tpu.memory_space<vmem>>) attributes {dimension_semantics = [#tpu.dimension_semantics<parallel>], iteration_bounds = array<i64: 1>, scalar_prefetch = 0 : i64, scratch_operands = 0 : i64, tpu.core_type = #tpu.core_type<tc>, window_params = [{transform_indices = @transform_0, window_bounds = array<i64: 2, 128>}, {pipeline_mode = #tpu.pipeline_mode<synchronous>, transform_indices = @transform_1, window_bounds = array<i64: 128, 128>}, {pipeline_mode = #tpu.pipeline_mode<synchronous>, transform_indices = @transform_2, window_bounds = array<i64: 1, 128>}, {transform_indices = @transform_3, window_bounds = array<i64: 2, 128>}]} {
    %c0 = arith.constant 0 : index
    %c0_0 = arith.constant 0 : index
    %0 = vector.load %arg1[%c0, %c0_0] : memref<2x128xbf16, #tpu.memory_space<vmem>>, vector<2x128xbf16>
    %c0_1 = arith.constant 0 : index
    %c0_2 = arith.constant 0 : index
    %1 = vector.load %arg2[%c0_1, %c0_2] : memref<128x128xbf16, #tpu.memory_space<vmem>>, vector<128x128xbf16>
    %cst = arith.constant dense<0.000000e+00> : vector<2x128xf32>
    %2 = tpu.matmul %0, %1, %cst {dimension_numbers = #tpu.dot_dimension_numbers<[1], [0], [0], [1], [0, 0, 1, 1], [], []>} : vector<2x128xbf16>, vector<128x128xbf16>, vector<2x128xf32> -> vector<2x128xf32>
    %c0_3 = arith.constant 0 : index
    %c0_4 = arith.constant 0 : index
    %3 = vector.load %arg3[%c0_3, %c0_4] : memref<1x128xf32, #tpu.memory_space<vmem>>, vector<1x128xf32>
    %4 = vector.broadcast %3 : vector<1x128xf32> to vector<2x128xf32>
    %5 = arith.addf %2, %4 : vector<2x128xf32>
    %cst_5 = arith.constant dense<0xFF800000> : vector<2xf32>
    %6 = vector.multi_reduction <maximumf>, %5, %cst_5 [1] : vector<2x128xf32> to vector<2xf32>
    %7 = vector.shape_cast %6 : vector<2xf32> to vector<2x1xf32>
    %8 = vector.broadcast %7 : vector<2x1xf32> to vector<2x128xf32>
    %9 = arith.subf %5, %8 : vector<2x128xf32>
    %10 = math.exp %9 : vector<2x128xf32>
    %cst_6 = arith.constant dense<0.000000e+00> : vector<2xf32>
    %11 = vector.multi_reduction <add>, %10, %cst_6 [1] : vector<2x128xf32> to vector<2xf32>
    %12 = vector.shape_cast %11 : vector<2xf32> to vector<2x1xf32>
    %13 = tpu.reciprocal %12 {approx = true} : vector<2x1xf32> -> vector<2x1xf32>
    %14 = vector.broadcast %13 : vector<2x1xf32> to vector<2x128xf32>
    %15 = arith.mulf %10, %14 : vector<2x128xf32>
    %c0_7 = arith.constant 0 : index
    %c0_8 = arith.constant 0 : index
    %16 = vector.load %arg4[%c0_7, %c0_8] : memref<2x128xf32, #tpu.memory_space<vmem>>, vector<2x128xf32>
    tpu.vector_store %arg4[%c0_7, %c0_8], %15 {strides = array<i32>} : memref<2x128xf32, #tpu.memory_space<vmem>>, vector<2x128xf32>,
    return
  }
  func.func @transform_0(%arg0: i32) -> (i32, i32) {
    %c0_i32 = arith.constant 0 : i32
    %c0_i32_0 = arith.constant 0 : i32
    return %arg0, %c0_i32 : i32, i32
  }
  func.func @transform_1(%arg0: i32) -> (i32, i32) {
    %c0_i32 = arith.constant 0 : i32
    %c0_i32_0 = arith.constant 0 : i32
    %c0_i32_1 = arith.constant 0 : i32
    return %c0_i32, %c0_i32_0 : i32, i32
  }
  func.func @transform_2(%arg0: i32) -> (i32, i32) {
    %c0_i32 = arith.constant 0 : i32
    %c0_i32_0 = arith.constant 0 : i32
    %c0_i32_1 = arith.constant 0 : i32
    return %c0_i32, %c0_i32_0 : i32, i32
  }
  func.func @transform_3(%arg0: i32) -> (i32, i32) {
    %c0_i32 = arith.constant 0 : i32
    %c0_i32_0 = arith.constant 0 : i32
    return %arg0, %c0_i32 : i32, i32
  }
}

</mosaic_0001>

<bundles_post_ra>
// kernel: tpu_custom_call.1
= control target key start
LH: loop header
LB: loop body
LE: loop exit
PB: predicated region body
PF: predicated region fallthrough
CT: control target
= control target key end

     0   :  { %8 = vsyncpa [#allocation3], 0  ;;  %s385_s0 = inlined_call_operand.hbm [shape: bf16[2,128], index: 0, kind: input, shape index: {}]   ;;  %s386_s1 = inlined_call_operand.hbm [shape: bf16[128,128], index: 1, kind: input, shape index: {}]   ;;  %s387_s2 = inlined_call_operand.vmem [shape: f32[1,128], index: 2, kind: input, shape index: {}]   ;;  %s388_s3 = inlined_call_operand.hbm [shape: f32[2,128], index: 3, kind: output, shape index: {}]  }
   0x1   :  { %9 = vsyncpa [#allocation6], 0 }
   0x2   :  { %10 = vsyncpa [#allocation4], 0  ;;  %s312_s12 = smov [#allocation2]   ;;  %s313_s14 = smov [#allocation5]  }
   0x3   :  { %s17_s13 = sshll.u32 %s312_s12, 4  ;;  %s26_s15 = sshll.u32 %s313_s14, 4  ;;  %s18_s13 = int_to_ptr.vmem [resolvable:$true] %s17_s13  ;;  %s339_s15 = int_to_ptr.vmem [resolvable:$true] %s26_s15 }
   0x4   :  { %s240_s18 = scalar_lea.hbm %s385_s0, 16 }
   0x5   :  { %p241_p0 = scmp.ne.s32.totalorder %s385_s0, %s240_s18  ;;  %p244_p1 = scmp.lt.u32.totalorder %s240_s18, %s385_s0 }
   0x7   :  { %p246_p2 = pnand %p244_p1, %p241_p0 }
   0x9   :  { %249 = shalt.err (!%p246_p2)
}
   0xa   :  { %s250_s23 = scalar_lea.vmem %s18_s13, 16  ;;  %s254_s24 = scalar_lea.vmem %s18_s13, 32 }
   0xb   :  { %p251_p3 = scmp.ne.s32.totalorder %s18_s13, %s250_s23  ;;  %p255_p4 = scmp.lt.s32.totalorder %s18_s13, %s18_s13 }
   0xc   :  { %p256_p5 = scmp.lt.s32.totalorder %s254_s24, %s250_s23 }
   0xe   :  { %p257_p6 = por %p256_p5, %p255_p4 }
  0x10   :  { %p258_p7 = pnand %p257_p6, %p251_p3 }
  0x12   :  { %261 = shalt.err (!%p258_p7)
}
  0x13   :  { %20 = dma.hbm_to_vmem [thread:$0]  %s385_s0, 16, %s18_s13, [#allocation3]  }
  0x14   :  { %s262_s29 = scalar_lea.hbm %s386_s1, 1024 }
  0x15   :  { %p263_p8 = scmp.ne.s32.totalorder %s386_s1, %s262_s29  ;;  %p266_p9 = scmp.lt.u32.totalorder %s262_s29, %s386_s1 }
  0x17   :  { %p268_p10 = pnand %p266_p9, %p263_p8 }
  0x19   :  { %271 = shalt.err (!%p268_p10)
}
  0x1a   :  { %s272_s7 = scalar_lea.vmem %s339_s15, 1024  ;;  %p277_p12 = scmp.lt.s32.totalorder %s339_s15, %s339_s15 }
  0x1b   :  { %p273_p11 = scmp.ne.s32.totalorder %s339_s15, %s272_s7  ;;  %p278_p13 = scmp.lt.s32.totalorder %s272_s7, %s272_s7 }
  0x1d   :  { %p279_p0 = por %p278_p13, %p277_p12 }
  0x1f   :  { %p280_p1 = pnand %p279_p0, %p273_p11 }
  0x21   :  { %283 = shalt.err (!%p280_p1)
}
  0x22   :  { %s314_s0 = smov 64   ;;  %s315_s8 = smov 4  }
  0x23   :  { %32 = dma.hbm_to_vmem [thread:$0]  %s386_s1, 1024, %s339_s15, [#allocation6], %s314_s0, %s314_s0, %s315_s8  }
  0x24   :  { %306 = dma.done.wait [#allocation3], 16  }
  0x25   :  { %307 = vsyncadd [#allocation3], 4294967280 }
  0x26   :  { %308 = dma.done.wait [#allocation6], 1024  }
  0x27   :  { %309 = vsyncadd [#allocation6], 4294966272  ;;  %v316_v0 = vmov 0.0   ;;  %vm317_vm0 = vmmov 0   ;;  %v228_v1 = vld [vmem:[#allocation5] sm:$0xff]   ;;  %v229_v2 = vld [vmem:[#allocation5 + $0x8] sm:$0xff]  }
  0x28   :  { %201 = vmatprep.subr.bf16.mxu0 %v316_v0  ;;  %217 = vmatprep.mubr.msk.bf16.mxu0 %vm317_vm0, %v316_v0  ;;  %v230_v3 = vld [vmem:[#allocation5 + $0x10] sm:$0xff]   ;;  %v231_v4 = vld [vmem:[#allocation5 + $0x18] sm:$0xff]   ;;  %v232_v5 = vld [vmem:[#allocation5 + $0x20] sm:$0xff]   ;;  %vm154_vm1 = vcmask 1041408   ;;  %s318_s12 = smov [#allocation7]  }
  0x29   :  { %202 = vmatpush3.bf16.msra.mxu0 %v228_v1  ;;  %v233_v6 = vld [vmem:[#allocation5 + $0x28] sm:$0xff]   ;;  %v234_v7 = vld [vmem:[#allocation5 + $0x30] sm:$0xff]   ;;  %v235_v8 = vld [vmem:[#allocation5 + $0x38] sm:$0xff]   ;;  %s173_s13 = sshll.u32 %s318_s12, 4  ;;  %s174_s13 = int_to_ptr.vmem [resolvable:$true] %s173_s13 }
  0x2a   :  { %203 = vmatprep.subr.bf16.mxu0 %v316_v0  ;;  %v42_v9 = vld [vmem:[#allocation2] sm:$0x1]  ;;  %p289_p3 = scmp.lt.s32.totalorder %s174_s13, %s174_s13 }
  0x2b   :  { %v183_v10 = vld [vmem:[%s387_s2] ss:$0 sm:$0xff]  ;;  %s284_s2 = scalar_lea.vmem %s174_s13, 32 }
  0x2c   :  { %p285_p2 = scmp.ne.s32.totalorder %s174_s13, %s284_s2  ;;  %p290_p4 = scmp.lt.s32.totalorder %s284_s2, %s284_s2 }
  0x2d   :  { %204 = vmatpush3.bf16.msra.mxu0 %v229_v2 }
  0x2e   :  { %205 = vmatprep.subr.bf16.mxu0 %v316_v0  ;;  %p291_p5 = por %p290_p4, %p289_p3 }
  0x30   :  { %p292_p6 = pnand %p291_p5, %p285_p2 }
  0x31   :  { %206 = vmatpush3.bf16.msra.mxu0 %v230_v3 }
  0x32   :  { %207 = vmatprep.subr.bf16.mxu0 %v316_v0 }
  0x35   :  { %208 = vmatpush3.bf16.msra.mxu0 %v231_v4 }
  0x36   :  { %209 = vmatprep.subr.bf16.mxu0 %v316_v0 }
  0x39   :  { %210 = vmatpush3.bf16.msra.mxu0 %v232_v5 }
  0x3a   :  { %211 = vmatprep.subr.bf16.mxu0 %v316_v0 }
  0x3d   :  { %212 = vmatpush3.bf16.msra.mxu0 %v233_v6 }
  0x3e   :  { %213 = vmatprep.subr.bf16.mxu0 %v316_v0 }
  0x41   :  { %214 = vmatpush3.bf16.msra.mxu0 %v234_v7 }
  0x42   :  { %215 = vmatprep.subr.bf16.mxu0 %v316_v0 }
  0x45   :  { %216 = vmatpush3.bf16.msra.mxu0 %v235_v8 }
  0x48   :  { %218 = vmatmul.mubr.bf16.vlgmr.msra.gmra.mrb[0].mxu0 %v42_v9 }
 0x11b   :  { %v148_v11 = vpop.f32.mrb[0].mxu0 }
 0x11c   :  { %v149_v12 = vadd.f32 %v183_v10, %v148_v11  ;;  %v219_v13 = vpop.f32.mrb[1].mxu0 }
 0x11d   :  { %v151_v14 = vpop.f32.mrb[2].mxu0 }
 0x11e   :  { %v220_v15 = vpop.f32.mrb[3].mxu0  ;;  %v155_v16 = vsel %vm154_vm1, %v149_v12, -inf }
 0x11f   :  { %156 = vmax.xlane.f32.xlu0 %v155_v16 }
 0x1ac   :  { %v157_v17 = vpop.xlane.xlu0 %156 }
 0x1ad   :  { %v158_v18 = vsub.f32 %v149_v12, %v157_v17 }
 0x1af   :  { %v159_v19 = vmul.f32 1.442695, %v158_v18 }
 0x1b1   :  { %236 = vpow2.f32 %v159_v19 }
 0x1bb   :  { %v237_v20 = vpop.eup %236 }
 0x1bc   :  { %v161_v21 = vsel %vm154_vm1, %v237_v20, 0.0 }
 0x1bd   :  { %162 = vadd.xlane.f32.xlu0 %v161_v21 }
 0x24a   :  { %v163_v22 = vpop.xlane.xlu0 %162 }
 0x24b   :  { %238 = vrcp.f32 %v163_v22 }
 0x255   :  { %v239_v23 = vpop.eup %238 }
 0x256   :  { %v165_v24 = vmul.f32 %v239_v23, %v237_v20 }
 0x258   :  { %166 = vst [vmem:[#allocation7] sm:$0x3] %v165_v24 }
 0x259   :  { %295 = shalt.err (!%p292_p6)
}
 0x25a   :  { %s296_s16 = scalar_lea.hbm %s388_s3, 32 }
 0x25b   :  { %p297_p7 = scmp.ne.s32.totalorder %s388_s3, %s296_s16  ;;  %p300_p8 = scmp.lt.u32.totalorder %s296_s16, %s388_s3 }
 0x25d   :  { %p302_p9 = pnand %p300_p8, %p297_p7 }
 0x25f   :  { %305 = shalt.err (!%p302_p9)
}
 0x260   :  { %176 = dma.vmem_to_hbm [thread:$0]  %s174_s13, 32, %s388_s3, [#allocation4]  }
 0x261   :  { %310 = dma.done.wait [#allocation4], 32  }
 0x262   :  { %311 = vsyncadd [#allocation4], 4294967264 }
 0x263   :  { %180 = vsyncpa [#allocation3], 1 }
 0x264   :  { %181 = vsyncpa [#allocation6], 1 }
 0x265   :  { %182 = vsyncpa [#allocation4], 1 }

// kernel: tpu_custom_call.1
= control target key start
LH: loop header
LB: loop body
LE: loop exit
PB: predicated region body
PF: predicated region fallthrough
CT: control target
= control target key end

     0   :  { %8 = vsyncpa [#allocation3], 0  ;;  %s385_s0 = inlined_call_operand.hbm [shape: bf16[2,128], index: 0, kind: input, shape index: {}]   ;;  %s386_s1 = inlined_call_operand.hbm [shape: bf16[128,128], index: 1, kind: input, shape index: {}]   ;;  %s387_s2 = inlined_call_operand.vmem [shape: f32[1,128], index: 2, kind: input, shape index: {}]   ;;  %s388_s3 = inlined_call_operand.hbm [shape: f32[2,128], index: 3, kind: output, shape index: {}]  }
   0x1   :  { %9 = vsyncpa [#allocation6], 0 }
   0x2   :  { %10 = vsyncpa [#allocation4], 0  ;;  %s312_s12 = smov [#allocation2]   ;;  %s313_s14 = smov [#allocation5]  }
   0x3   :  { %s17_s13 = sshll.u32 %s312_s12, 4  ;;  %s26_s15 = sshll.u32 %s313_s14, 4  ;;  %s18_s13 = int_to_ptr.vmem [resolvable:$true] %s17_s13  ;;  %s339_s15 = int_to_ptr.vmem [resolvable:$true] %s26_s15 }
   0x4   :  { %s240_s18 = scalar_lea.hbm %s385_s0, 16 }
   0x5   :  { %p241_p0 = scmp.ne.s32.totalorder %s385_s0, %s240_s18  ;;  %p244_p1 = scmp.lt.u32.totalorder %s240_s18, %s385_s0 }
   0x7   :  { %p246_p2 = pnand %p244_p1, %p241_p0 }
   0x9   :  { %249 = shalt.err (!%p246_p2)
}
   0xa   :  { %s250_s23 = scalar_lea.vmem %s18_s13, 16  ;;  %s254_s24 = scalar_lea.vmem %s18_s13, 32 }
   0xb   :  { %p251_p3 = scmp.ne.s32.totalorder %s18_s13, %s250_s23  ;;  %p255_p4 = scmp.lt.s32.totalorder %s18_s13, %s18_s13 }
   0xc   :  { %p256_p5 = scmp.lt.s32.totalorder %s254_s24, %s250_s23 }
   0xe   :  { %p257_p6 = por %p256_p5, %p255_p4 }
  0x10   :  { %p258_p7 = pnand %p257_p6, %p251_p3 }
  0x12   :  { %261 = shalt.err (!%p258_p7)
}
  0x13   :  { %20 = dma.hbm_to_vmem [thread:$0]  %s385_s0, 16, %s18_s13, [#allocation3]  }
  0x14   :  { %s262_s29 = scalar_lea.hbm %s386_s1, 1024 }
  0x15   :  { %p263_p8 = scmp.ne.s32.totalorder %s386_s1, %s262_s29  ;;  %p266_p9 = scmp.lt.u32.totalorder %s262_s29, %s386_s1 }
  0x17   :  { %p268_p10 = pnand %p266_p9, %p263_p8 }
  0x19   :  { %271 = shalt.err (!%p268_p10)
}
  0x1a   :  { %s272_s7 = scalar_lea.vmem %s339_s15, 1024  ;;  %p277_p12 = scmp.lt.s32.totalorder %s339_s15, %s339_s15 }
  0x1b   :  { %p273_p11 = scmp.ne.s32.totalorder %s339_s15, %s272_s7  ;;  %p278_p13 = scmp.lt.s32.totalorder %s272_s7, %s272_s7 }
  0x1d   :  { %p279_p0 = por %p278_p13, %p277_p12 }
  0x1f   :  { %p280_p1 = pnand %p279_p0, %p273_p11 }
  0x21   :  { %283 = shalt.err (!%p280_p1)
}
  0x22   :  { %s314_s0 = smov 64   ;;  %s315_s8 = smov 4  }
  0x23   :  { %32 = dma.hbm_to_vmem [thread:$0]  %s386_s1, 1024, %s339_s15, [#allocation6], %s314_s0, %s314_s0, %s315_s8  }
  0x24   :  { %306 = dma.done.wait [#allocation3], 16  }
  0x25   :  { %307 = vsyncadd [#allocation3], 4294967280 }
  0x26   :  { %308 = dma.done.wait [#allocation6], 1024  }
  0x27   :  { %309 = vsyncadd [#allocation6], 4294966272  ;;  %v316_v0 = vmov 0.0   ;;  %vm317_vm0 = vmmov 0   ;;  %v228_v1 = vld [vmem:[#allocation5] sm:$0xff]   ;;  %v229_v2 = vld [vmem:[#allocation5 + $0x8] sm:$0xff]  }
  0x28   :  { %201 = vmatprep.subr.bf16.mxu0 %v316_v0  ;;  %217 = vmatprep.mubr.msk.bf16.mxu0 %vm317_vm0, %v316_v0  ;;  %v230_v3 = vld [vmem:[#allocation5 + $0x10] sm:$0xff]   ;;  %v231_v4 = vld [vmem:[#allocation5 + $0x18] sm:$0xff]   ;;  %v232_v5 = vld [vmem:[#allocation5 + $0x20] sm:$0xff]   ;;  %vm154_vm1 = vcmask 1041408   ;;  %s318_s12 = smov [#allocation7]  }
  0x29   :  { %202 = vmatpush3.bf16.msra.mxu0 %v228_v1  ;;  %v233_v6 = vld [vmem:[#allocation5 + $0x28] sm:$0xff]   ;;  %v234_v7 = vld [vmem:[#allocation5 + $0x30] sm:$0xff]   ;;  %v235_v8 = vld [vmem:[#allocation5 + $0x38] sm:$0xff]   ;;  %s173_s13 = sshll.u32 %s318_s12, 4  ;;  %s174_s13 = int_to_ptr.vmem [resolvable:$true] %s173_s13 }
  0x2a   :  { %203 = vmatprep.subr.bf16.mxu0 %v316_v0  ;;  %v42_v9 = vld [vmem:[#allocation2] sm:$0x1]  ;;  %p289_p3 = scmp.lt.s32.totalorder %s174_s13, %s174_s13 }
  0x2b   :  { %v183_v10 = vld [vmem:[%s387_s2] ss:$0 sm:$0xff]  ;;  %s284_s2 = scalar_lea.vmem %s174_s13, 32 }
  0x2c   :  { %p285_p2 = scmp.ne.s32.totalorder %s174_s13, %s284_s2  ;;  %p290_p4 = scmp.lt.s32.totalorder %s284_s2, %s284_s2 }
  0x2d   :  { %204 = vmatpush3.bf16.msra.mxu0 %v229_v2 }
  0x2e   :  { %205 = vmatprep.subr.bf16.mxu0 %v316_v0  ;;  %p291_p5 = por %p290_p4, %p289_p3 }
  0x30   :  { %p292_p6 = pnand %p291_p5, %p285_p2 }
  0x31   :  { %206 = vmatpush3.bf16.msra.mxu0 %v230_v3 }
  0x32   :  { %207 = vmatprep.subr.bf16.mxu0 %v316_v0 }
  0x35   :  { %208 = vmatpush3.bf16.msra.mxu0 %v231_v4 }
  0x36   :  { %209 = vmatprep.subr.bf16.mxu0 %v316_v0 }
  0x39   :  { %210 = vmatpush3.bf16.msra.mxu0 %v232_v5 }
  0x3a   :  { %211 = vmatprep.subr.bf16.mxu0 %v316_v0 }
  0x3d   :  { %212 = vmatpush3.bf16.msra.mxu0 %v233_v6 }
  0x3e   :  { %213 = vmatprep.subr.bf16.mxu0 %v316_v0 }
  0x41   :  { %214 = vmatpush3.bf16.msra.mxu0 %v234_v7 }
  0x42   :  { %215 = vmatprep.subr.bf16.mxu0 %v316_v0 }
  0x45   :  { %216 = vmatpush3.bf16.msra.mxu0 %v235_v8 }
  0x48   :  { %218 = vmatmul.mubr.bf16.vlgmr.msra.gmra.mrb[0].mxu0 %v42_v9 }
 0x11b   :  { %v148_v11 = vpop.f32.mrb[0].mxu0 }
 0x11c   :  { %v149_v12 = vadd.f32 %v183_v10, %v148_v11  ;;  %v219_v13 = vpop.f32.mrb[1].mxu0 }
 0x11d   :  { %v151_v14 = vpop.f32.mrb[2].mxu0 }
 0x11e   :  { %v220_v15 = vpop.f32.mrb[3].mxu0  ;;  %v155_v16 = vsel %vm154_vm1, %v149_v12, -inf }
 0x11f   :  { %156 = vmax.xlane.f32.xlu0 %v155_v16 }
 0x1ac   :  { %v157_v17 = vpop.xlane.xlu0 %156 }
 0x1ad   :  { %v158_v18 = vsub.f32 %v149_v12, %v157_v17 }
 0x1af   :  { %v159_v19 = vmul.f32 1.442695, %v158_v18 }
 0x1b1   :  { %236 = vpow2.f32 %v159_v19 }
 0x1bb   :  { %v237_v20 = vpop.eup %236 }
 0x1bc   :  { %v161_v21 = vsel %vm154_vm1, %v237_v20, 0.0 }
 0x1bd   :  { %162 = vadd.xlane.f32.xlu0 %v161_v21 }
 0x24a   :  { %v163_v22 = vpop.xlane.xlu0 %162 }
 0x24b   :  { %238 = vrcp.f32 %v163_v22 }
 0x255   :  { %v239_v23 = vpop.eup %238 }
 0x256   :  { %v165_v24 = vmul.f32 %v239_v23, %v237_v20 }
 0x258   :  { %166 = vst [vmem:[#allocation7] sm:$0x3] %v165_v24 }
 0x259   :  { %295 = shalt.err (!%p292_p6)
}
 0x25a   :  { %s296_s16 = scalar_lea.hbm %s388_s3, 32 }
 0x25b   :  { %p297_p7 = scmp.ne.s32.totalorder %s388_s3, %s296_s16  ;;  %p300_p8 = scmp.lt.u32.totalorder %s296_s16, %s388_s3 }
 0x25d   :  { %p302_p9 = pnand %p300_p8, %p297_p7 }
 0x25f   :  { %305 = shalt.err (!%p302_p9)
}
 0x260   :  { %176 = dma.vmem_to_hbm [thread:$0]  %s174_s13, 32, %s388_s3, [#allocation4]  }
 0x261   :  { %310 = dma.done.wait [#allocation4], 32  }
 0x262   :  { %311 = vsyncadd [#allocation4], 4294967264 }
 0x263   :  { %180 = vsyncpa [#allocation3], 1 }
 0x264   :  { %181 = vsyncpa [#allocation6], 1 }
 0x265   :  { %182 = vsyncpa [#allocation4], 1 }

</bundles_post_ra>
